<compile_context>
chip_gen: v6e
topology: v6e:2x2x1
jax: 0.10.0
libtpu: 0.0.40
codegen_flags: <defaults>
</compile_context>

<pallas_src>
import functools

import jax
import jax.numpy as jnp
from jax import lax
from jax.experimental import pallas as pl
from jax.experimental.pallas import tpu as pltpu


def _spatial_attention_kernel(x_ref, cm_ref, o_ref, *, C):
    """One batch tile per grid step.

    x_ref  : VMEM (TB, C, HW)   input images, spatial dims flattened
    cm_ref : VMEM (2, HW, HW)   conv-as-matmul matrices [avg (w/C), max]
    o_ref  : VMEM (TB, HW)      output attention map (flattened spatial)
    """
    # Fused single pass over C: running (f32) sum and running max.
    x0 = x_ref[:, 0, :]
    s = x0.astype(jnp.float32)        # channel sum (1/C folded into cm_ref[0])
    m = x0                            # channel max (kept in input dtype)
    for c in range(1, C):
        xc = x_ref[:, c, :]
        s = s + xc.astype(jnp.float32)
        m = jnp.maximum(m, xc)

    # KxK conv with zero padding == dense linear map on the flattened spatial
    # axis -> two small MXU matmuls per grid step.
    y = jnp.dot(s, cm_ref[0], preferred_element_type=jnp.float32)
    y = y + jnp.dot(m.astype(jnp.float32), cm_ref[1],
                    preferred_element_type=jnp.float32)

    o_ref[...] = jax.nn.sigmoid(y).astype(o_ref.dtype)


def _build_conv_matrix(conv_weight, C, H, W, K, P):
    """conv_weight (1, 2, K, K) -> M (2, HW, HW) with y_flat = sum_c feat_c @ M[c].

    M[c, hi*W + wi, ho*W + wo] = w[c, hi - ho + P, wi - wo + P]  (0 outside the
    kernel window), which reproduces the zero-padded 'same' convolution.  The
    1/C of the channel mean is folded into the avg-channel (c = 0) weights.
    """
    w = conv_weight.astype(jnp.float32)[0]                          # (2, K, K)
    w = w * jnp.array([1.0 / C, 1.0], jnp.float32)[:, None, None]
    dh = jnp.arange(H)[:, None] - jnp.arange(H)[None, :] + P        # (H_in, H_out)
    dw = jnp.arange(W)[:, None] - jnp.arange(W)[None, :] + P        # (W_in, W_out)
    vh = (dh >= 0) & (dh < K)
    vw = (dw >= 0) & (dw < K)
    dh = jnp.clip(dh, 0, K - 1)
    dw = jnp.clip(dw, 0, K - 1)
    # m5[c, hi, ho, wi, wo] = w[c, dh[hi, ho], dw[wi, wo]]
    m5 = w[:, dh[:, :, None, None], dw[None, None, :, :]]           # (2,H,H,W,W)
    m5 = m5 * (vh[:, :, None, None] & vw[None, None, :, :]).astype(jnp.float32)
    return m5.transpose(0, 1, 3, 2, 4).reshape(2, H * W, H * W)


def spatial_attention(x, conv_weight, kernel_size=7, *, batch_tile=8):
    """x: (N, C, H, W); conv_weight: (1, 2, K, K)  ->  (N, 1, H, W)."""
    assert kernel_size in (3, 7), "kernel size must be 3 or 7"
    assert batch_tile % 8 == 0, "batch_tile must be a multiple of 8"
    N, C, H, W = x.shape
    K = kernel_size
    P = 3 if K == 7 else 1
    HW = H * W
    assert HW <= 1024, (
        "dense conv-matrix path is sized for small/moderate feature maps; "
        "use a banded/rolled conv formulation for larger H*W")

    conv_mat = _build_conv_matrix(conv_weight, C, H, W, K, P)       # (2, HW, HW)

    # Batch tiling: TB images per grid step.  Pad N up if needed so the sublane
    # dim of the output block is either the full dim or a multiple of 8.
    if N <= batch_tile:
        TB, Np = N, N
        xp = x
    else:
        TB = batch_tile
        Np = ((N + TB - 1) // TB) * TB
        xp = jnp.pad(x, ((0, Np - N), (0, 0), (0, 0), (0, 0))) if Np != N else x

    x_flat = xp.reshape(Np, C, HW)                                  # free reshape

    out_flat = pl.pallas_call(
        functools.partial(_spatial_attention_kernel, C=C),
        out_shape=jax.ShapeDtypeStruct((Np, HW), x.dtype),
        grid=(Np // TB,),
        in_specs=[
            pl.BlockSpec((TB, C, HW), lambda n: (n, 0, 0)),         # x batch tile
            pl.BlockSpec((2, HW, HW), lambda n: (0, 0, 0)),         # conv matrices (resident)
        ],
        out_specs=pl.BlockSpec((TB, HW), lambda n: (n, 0)),         # lane-dense output
        compiler_params=pltpu.CompilerParams(
            dimension_semantics=("parallel",),
            vmem_limit_bytes=64 * 1024 * 1024),
    )(x_flat, conv_mat)

    return out_flat[:N].reshape(N, 1, H, W)


def _reference(x, conv_weight, kernel_size=7):
    """Pure-JAX reference matching the PyTorch forward pass."""
    P = 3 if kernel_size == 7 else 1
    avg_out = jnp.mean(x, axis=1, keepdims=True)
    max_out = jnp.max(x, axis=1, keepdims=True)
    feat = jnp.concatenate([avg_out, max_out], axis=1)              # (N, 2, H, W)
    y = lax.conv_general_dilated(
        feat, conv_weight,
        window_strides=(1, 1), padding=[(P, P), (P, P)],
        dimension_numbers=("NCHW", "OIHW", "NCHW"),
        precision=lax.Precision.HIGHEST)
    return jax.nn.sigmoid(y)


if __name__ == "__main__":
    key = jax.random.PRNGKey(0)
    kx, kw = jax.random.split(key)

    N, C, H, W = 2, 4, 16, 16
    K = 7

    x = jax.random.normal(kx, (N, C, H, W), dtype=jnp.float32)

    # Deterministic conv weight init, PyTorch-default-like uniform bound.
    fan_in = 2 * K * K
    bound = 1.0 / (fan_in ** 0.5)
    conv_weight = jax.random.uniform(
        kw, (1, 2, K, K), dtype=jnp.float32, minval=-bound, maxval=bound)

    out = spatial_attention(x, conv_weight, kernel_size=K)
    out = jax.block_until_ready(out)

    ref = _reference(x, conv_weight, kernel_size=K)
    assert out.shape == (N, 1, H, W)
    # Tolerance allows for MXU vs HLO-conv internal precision differences.
    assert jnp.allclose(out, ref, atol=2e-3, rtol=2e-3), "mismatch vs reference"

    print("KERNEL_OK")
</pallas_src>

<mosaic_0001>
module attributes {stable_mosaic.version = 11 : i64} {
  func.func @_spatial_attention_kernel(%arg0: i32, %arg1: memref<2x4x256xf32, #tpu.memory_space<vmem>>, %arg2: memref<2x256x256xf32, #tpu.memory_space<vmem>>, %arg3: memref<2x256xf32, #tpu.memory_space<vmem>>) attributes {dimension_semantics = [#tpu.dimension_semantics<parallel>], iteration_bounds = array<i64: 1>, scalar_prefetch = 0 : i64, scratch_operands = 0 : i64, tpu.core_type = #tpu.core_type<tc>, window_params = [{transform_indices = @transform_0, window_bounds = array<i64: 2, 4, 256>}, {pipeline_mode = #tpu.pipeline_mode<synchronous>, transform_indices = @transform_1, window_bounds = array<i64: 2, 256, 256>}, {transform_indices = @transform_2, window_bounds = array<i64: 2, 256>}]} {
    %c0 = arith.constant 0 : index
    %c0_0 = arith.constant 0 : index
    %c0_1 = arith.constant 0 : index
    %0 = vector.load %arg1[%c0, %c0_0, %c0_1] : memref<2x4x256xf32, #tpu.memory_space<vmem>>, vector<2x1x256xf32>
    %1 = vector.shape_cast %0 : vector<2x1x256xf32> to vector<2x256xf32>
    %c0_2 = arith.constant 0 : index
    %c1 = arith.constant 1 : index
    %c0_3 = arith.constant 0 : index
    %2 = vector.load %arg1[%c0_2, %c1, %c0_3] : memref<2x4x256xf32, #tpu.memory_space<vmem>>, vector<2x1x256xf32>
    %3 = vector.shape_cast %2 : vector<2x1x256xf32> to vector<2x256xf32>
    %4 = arith.addf %1, %3 : vector<2x256xf32>
    %5 = arith.maximumf %1, %3 : vector<2x256xf32>
    %c0_4 = arith.constant 0 : index
    %c2 = arith.constant 2 : index
    %c0_5 = arith.constant 0 : index
    %6 = vector.load %arg1[%c0_4, %c2, %c0_5] : memref<2x4x256xf32, #tpu.memory_space<vmem>>, vector<2x1x256xf32>
    %7 = vector.shape_cast %6 : vector<2x1x256xf32> to vector<2x256xf32>
    %8 = arith.addf %4, %7 : vector<2x256xf32>
    %9 = arith.maximumf %5, %7 : vector<2x256xf32>
    %c0_6 = arith.constant 0 : index
    %c3 = arith.constant 3 : index
    %c0_7 = arith.constant 0 : index
    %10 = vector.load %arg1[%c0_6, %c3, %c0_7] : memref<2x4x256xf32, #tpu.memory_space<vmem>>, vector<2x1x256xf32>
    %11 = vector.shape_cast %10 : vector<2x1x256xf32> to vector<2x256xf32>
    %12 = arith.addf %8, %11 : vector<2x256xf32>
    %13 = arith.maximumf %9, %11 : vector<2x256xf32>
    %c0_8 = arith.constant 0 : index
    %c0_9 = arith.constant 0 : index
    %c0_10 = arith.constant 0 : index
    %14 = vector.load %arg2[%c0_8, %c0_9, %c0_10] : memref<2x256x256xf32, #tpu.memory_space<vmem>>, vector<1x256x256xf32>
    %15 = vector.shape_cast %14 : vector<1x256x256xf32> to vector<256x256xf32>
    %cst = arith.constant dense<0.000000e+00> : vector<2x256xf32>
    %16 = tpu.matmul %12, %15, %cst {dimension_numbers = #tpu.dot_dimension_numbers<[1], [0], [0], [1], [0, 0, 1, 1], [], []>} : vector<2x256xf32>, vector<256x256xf32>, vector<2x256xf32> -> vector<2x256xf32>
    %c1_11 = arith.constant 1 : index
    %c0_12 = arith.constant 0 : index
    %c0_13 = arith.constant 0 : index
    %17 = vector.load %arg2[%c1_11, %c0_12, %c0_13] : memref<2x256x256xf32, #tpu.memory_space<vmem>>, vector<1x256x256xf32>
    %18 = vector.shape_cast %17 : vector<1x256x256xf32> to vector<256x256xf32>
    %cst_14 = arith.constant dense<0.000000e+00> : vector<2x256xf32>
    %19 = tpu.matmul %13, %18, %cst_14 {dimension_numbers = #tpu.dot_dimension_numbers<[1], [0], [0], [1], [0, 0, 1, 1], [], []>} : vector<2x256xf32>, vector<256x256xf32>, vector<2x256xf32> -> vector<2x256xf32>
    %20 = arith.addf %16, %19 : vector<2x256xf32>
    %21 = arith.negf %20 : vector<2x256xf32>
    %22 = math.exp %21 : vector<2x256xf32>
    %cst_15 = arith.constant 1.000000e+00 : f32
    %23 = vector.broadcast %cst_15 : f32 to vector<2x256xf32>
    %24 = arith.addf %23, %22 : vector<2x256xf32>
    %25 = arith.divf %23, %24 : vector<2x256xf32>
    %c0_16 = arith.constant 0 : index
    %c0_17 = arith.constant 0 : index
    %26 = vector.load %arg3[%c0_16, %c0_17] : memref<2x256xf32, #tpu.memory_space<vmem>>, vector<2x256xf32>
    tpu.vector_store %arg3[%c0_16, %c0_17], %25 {strides = array<i32>} : memref<2x256xf32, #tpu.memory_space<vmem>>, vector<2x256xf32>,
    return
  }
  func.func @transform_0(%arg0: i32) -> (i32, i32, i32) {
    %c0_i32 = arith.constant 0 : i32
    %c0_i32_0 = arith.constant 0 : i32
    %c0_i32_1 = arith.constant 0 : i32
    return %arg0, %c0_i32, %c0_i32_0 : i32, i32, i32
  }
  func.func @transform_1(%arg0: i32) -> (i32, i32, i32) {
    %c0_i32 = arith.constant 0 : i32
    %c0_i32_0 = arith.constant 0 : i32
    %c0_i32_1 = arith.constant 0 : i32
    %c0_i32_2 = arith.constant 0 : i32
    return %c0_i32, %c0_i32_0, %c0_i32_1 : i32, i32, i32
  }
  func.func @transform_2(%arg0: i32) -> (i32, i32) {
    %c0_i32 = arith.constant 0 : i32
    %c0_i32_0 = arith.constant 0 : i32
    return %arg0, %c0_i32 : i32, i32
  }
}

</mosaic_0001>

<bundles_post_ra>
// kernel: tpu_custom_call.1
= control target key start
LH: loop header
LB: loop body
LE: loop exit
PB: predicated region body
PF: predicated region fallthrough
CT: control target
= control target key end

     0   :  { %7 = vsyncpa [#allocation3], 0  ;;  %s557_s0 = inlined_call_operand.hbm [shape: f32[2,4,256], index: 0, kind: input, shape index: {}]   ;;  %s558_s1 = inlined_call_operand.hbm [shape: f32[2,256,256], index: 1, kind: input, shape index: {}]   ;;  %s559_s2 = inlined_call_operand.hbm [shape: f32[2,256], index: 2, kind: output, shape index: {}]  }
   0x1   :  { %8 = vsyncpa [#allocation6], 0 }
   0x2   :  { %9 = vsyncpa [#allocation4], 0  ;;  %s517_s9 = smov [#allocation2]  }
   0x3   :  { %s15_s10 = sshll.u32 %s517_s9, 4  ;;  %s16_s10 = int_to_ptr.vmem [resolvable:$true] %s15_s10 }
   0x4   :  { %s459_s11 = scalar_lea.vmem %s16_s10, 256  ;;  %p464_p1 = scmp.lt.s32.totalorder %s16_s10, %s16_s10 }
   0x5   :  { %p460_p0 = scmp.ne.s32.totalorder %s16_s10, %s459_s11  ;;  %p465_p2 = scmp.lt.s32.totalorder %s459_s11, %s459_s11 }
   0x7   :  { %p466_p3 = por %p465_p2, %p464_p1 }
   0x9   :  { %p467_p4 = pnand %p466_p3, %p460_p0 }
   0xb   :  { %470 = shalt.err (!%p467_p4)
}
   0xc   :  { %s518_s12 = smov 128   ;;  %s519_s13 = smov 8  }
   0xd   :  { %21 = dma.hbm_to_vmem [thread:$0]  %s557_s0, 256, %s16_s10, [#allocation3], %s518_s12, %s518_s12, %s519_s13  }
   0xe   :  { %s520_s16 = smov [#allocation5]  }
   0xf   :  { %s27_s17 = sshll.u32 %s520_s16, 4  ;;  %s28_s17 = int_to_ptr.vmem [resolvable:$true] %s27_s17 }
  0x10   :  { %s479_s18 = scalar_lea.vmem %s28_s17, 16384  ;;  %p484_p6 = scmp.lt.s32.totalorder %s28_s17, %s28_s17 }
  0x11   :  { %p480_p5 = scmp.ne.s32.totalorder %s28_s17, %s479_s18  ;;  %p485_p7 = scmp.lt.s32.totalorder %s479_s18, %s479_s18 }
  0x13   :  { %p486_p8 = por %p485_p7, %p484_p6 }
  0x15   :  { %p487_p9 = pnand %p486_p8, %p480_p5 }
  0x17   :  { %490 = shalt.err (!%p487_p9)
}
  0x18   :  { %s521_s19 = smov 256   ;;  %s522_s20 = smov 16  }
  0x19   :  { %33 = dma.hbm_to_vmem [thread:$0]  %s558_s1, 16384, %s28_s17, [#allocation6], %s521_s19, %s521_s19, %s522_s20  }
  0x1a   :  { %511 = dma.done.wait [#allocation3], 256  }
  0x1b   :  { %512 = vsyncadd [#allocation3], 4294967040 }
  0x1c   :  { %513 = dma.done.wait [#allocation6], 16384  }
  0x1d   :  { %514 = vsyncadd [#allocation6], 4294950912  ;;  %v163_v0 = vld [vmem:[#allocation5 + $0x2f8] sm:$0xff]  ;;  %v162_v2 = vld [vmem:[#allocation5 + $0x2f0] sm:$0xff]  ;;  %s524_s0 = smov [#allocation7]  }
  0x1e   :  { %v98_v1 = vld [vmem:[#allocation5 + $0xf8] sm:$0xff]  ;;  %223 = vmatprep.subr.mxu0 %v163_v0  ;;  %v97_v3 = vld [vmem:[#allocation5 + $0xf0] sm:$0xff]  ;;  %v161_v4 = vld [vmem:[#allocation5 + $0x2e8] sm:$0xff]  ;;  %s422_s1 = sshll.u32 %s524_s0, 4  ;;  %s423_s1 = int_to_ptr.vmem [resolvable:$true] %s422_s1 }
  0x1f   :  { %321 = vmatprep.subr.mxu1 %v98_v1  ;;  %v96_v5 = vld [vmem:[#allocation5 + $0xe8] sm:$0xff]  ;;  %224 = vmatpush1.msra.mxu0 %v162_v2  ;;  %v160_v6 = vld [vmem:[#allocation5 + $0x2e0] sm:$0xff]  ;;  %v159_v8 = vld [vmem:[#allocation5 + $0x2d8] sm:$0xff]  ;;  %s491_s23 = scalar_lea.vmem %s423_s1, 64  ;;  %p496_p11 = scmp.lt.s32.totalorder %s423_s1, %s423_s1 }
  0x20   :  { %322 = vmatpush1.msra.mxu1 %v97_v3  ;;  %v95_v7 = vld [vmem:[#allocation5 + $0xe0] sm:$0xff]  ;;  %225 = vmatprep.subr.mxu0 %v161_v4  ;;  %v94_v9 = vld [vmem:[#allocation5 + $0xd8] sm:$0xff]  ;;  %v158_v10 = vld [vmem:[#allocation5 + $0x2d0] sm:$0xff]  ;;  %p492_p10 = scmp.ne.s32.totalorder %s423_s1, %s491_s23  ;;  %p497_p12 = scmp.lt.s32.totalorder %s491_s23, %s491_s23 }
  0x21   :  { %323 = vmatprep.subr.mxu1 %v96_v5  ;;  %v93_v11 = vld [vmem:[#allocation5 + $0xd0] sm:$0xff]  ;;  %226 = vmatpush1.msra.mxu0 %v160_v6  ;;  %v157_v12 = vld [vmem:[#allocation5 + $0x2c8] sm:$0xff]  ;;  %v156_v14 = vld [vmem:[#allocation5 + $0x2c0] sm:$0xff] }
  0x22   :  { %324 = vmatpush1.msra.mxu1 %v95_v7  ;;  %v92_v13 = vld [vmem:[#allocation5 + $0xc8] sm:$0xff]  ;;  %227 = vmatprep.subr.mxu0 %v159_v8  ;;  %v91_v15 = vld [vmem:[#allocation5 + $0xc0] sm:$0xff]  ;;  %v155_v16 = vld [vmem:[#allocation5 + $0x2b8] sm:$0xff]  ;;  %p498_p13 = por %p497_p12, %p496_p11 }
  0x23   :  { %325 = vmatprep.subr.mxu1 %v94_v9  ;;  %228 = vmatpush1.msra.mxu0 %v158_v10  ;;  %v90_v17 = vld [vmem:[#allocation5 + $0xb8] sm:$0xff]  ;;  %v154_v18 = vld [vmem:[#allocation5 + $0x2b0] sm:$0xff]  ;;  %v153_v20 = vld [vmem:[#allocation5 + $0x2a8] sm:$0xff] }
  0x24   :  { %326 = vmatpush1.msra.mxu1 %v93_v11  ;;  %229 = vmatprep.subr.mxu0 %v157_v12  ;;  %v89_v19 = vld [vmem:[#allocation5 + $0xb0] sm:$0xff]  ;;  %v88_v21 = vld [vmem:[#allocation5 + $0xa8] sm:$0xff]  ;;  %v152_v22 = vld [vmem:[#allocation5 + $0x2a0] sm:$0xff]  ;;  %p499_p0 = pnand %p498_p13, %p492_p10 }
  0x25   :  { %327 = vmatprep.subr.mxu1 %v92_v13  ;;  %230 = vmatpush1.msra.mxu0 %v156_v14  ;;  %v87_v23 = vld [vmem:[#allocation5 + $0xa0] sm:$0xff]  ;;  %v151_v24 = vld [vmem:[#allocation5 + $0x298] sm:$0xff]  ;;  %v150_v26 = vld [vmem:[#allocation5 + $0x290] sm:$0xff] }
  0x26   :  { %328 = vmatpush1.msra.mxu1 %v91_v15  ;;  %231 = vmatprep.subr.mxu0 %v155_v16  ;;  %v86_v25 = vld [vmem:[#allocation5 + $0x98] sm:$0xff]  ;;  %v85_v27 = vld [vmem:[#allocation5 + $0x90] sm:$0xff]  ;;  %v149_v28 = vld [vmem:[#allocation5 + $0x288] sm:$0xff] }
  0x27   :  { %329 = vmatprep.subr.mxu1 %v90_v17  ;;  %232 = vmatpush1.msra.mxu0 %v154_v18  ;;  %v84_v29 = vld [vmem:[#allocation5 + $0x88] sm:$0xff]  ;;  %v148_v30 = vld [vmem:[#allocation5 + $0x280] sm:$0xff]  ;;  %v147_v32 = vld [vmem:[#allocation5 + $0x278] sm:$0xff] }
  0x28   :  { %330 = vmatpush1.msra.mxu1 %v89_v19  ;;  %233 = vmatprep.subr.mxu0 %v153_v20  ;;  %v83_v31 = vld [vmem:[#allocation5 + $0x80] sm:$0xff]  ;;  %v82_v33 = vld [vmem:[#allocation5 + $0x78] sm:$0xff]  ;;  %v146_v34 = vld [vmem:[#allocation5 + $0x270] sm:$0xff]  ;;  %v202_v19 = vlaneseq }
  0x29   :  { %331 = vmatprep.subr.mxu1 %v88_v21  ;;  %234 = vmatpush1.msra.mxu0 %v152_v22  ;;  %v81_v35 = vld [vmem:[#allocation5 + $0x70] sm:$0xff]  ;;  %v145_v36 = vld [vmem:[#allocation5 + $0x268] sm:$0xff]  ;;  %v144_v38 = vld [vmem:[#allocation5 + $0x260] sm:$0xff] }
  0x2a   :  { %332 = vmatpush1.msra.mxu1 %v87_v23  ;;  %235 = vmatprep.subr.mxu0 %v151_v24  ;;  %v80_v37 = vld [vmem:[#allocation5 + $0x68] sm:$0xff]  ;;  %v79_v39 = vld [vmem:[#allocation5 + $0x60] sm:$0xff]  ;;  %v143_v40 = vld [vmem:[#allocation5 + $0x258] sm:$0xff] }
  0x2b   :  { %333 = vmatprep.subr.mxu1 %v86_v25  ;;  %236 = vmatpush1.msra.mxu0 %v150_v26  ;;  %v78_v41 = vld [vmem:[#allocation5 + $0x58] sm:$0xff]  ;;  %v142_v42 = vld [vmem:[#allocation5 + $0x250] sm:$0xff]  ;;  %v141_v44 = vld [vmem:[#allocation5 + $0x248] sm:$0xff] }
  0x2c   :  { %334 = vmatpush1.msra.mxu1 %v85_v27  ;;  %237 = vmatprep.subr.mxu0 %v149_v28  ;;  %v77_v43 = vld [vmem:[#allocation5 + $0x50] sm:$0xff]  ;;  %v76_v45 = vld [vmem:[#allocation5 + $0x48] sm:$0xff]  ;;  %v140_v46 = vld [vmem:[#allocation5 + $0x240] sm:$0xff] }
  0x2d   :  { %335 = vmatprep.subr.mxu1 %v84_v29  ;;  %238 = vmatpush1.msra.mxu0 %v148_v30  ;;  %v75_v47 = vld [vmem:[#allocation5 + $0x40] sm:$0xff]  ;;  %v139_v48 = vld [vmem:[#allocation5 + $0x238] sm:$0xff]  ;;  %v138_v50 = vld [vmem:[#allocation5 + $0x230] sm:$0xff]  ;;  %v523_v29 = vmov 1966171168  }
  0x2e   :  { %336 = vmatpush1.msra.mxu1 %v83_v31  ;;  %239 = vmatprep.subr.mxu0 %v147_v32  ;;  %v74_v49 = vld [vmem:[#allocation5 + $0x38] sm:$0xff]  ;;  %v73_v51 = vld [vmem:[#allocation5 + $0x30] sm:$0xff]  ;;  %v137_v52 = vld [vmem:[#allocation5 + $0x228] sm:$0xff]  ;;  %v200_v30 = vunpack.c.l.s4 %v523_v29 }
  0x2f   :  { %337 = vmatprep.subr.mxu1 %v82_v33  ;;  %240 = vmatpush1.msra.mxu0 %v146_v34  ;;  %v72_v53 = vld [vmem:[#allocation5 + $0x28] sm:$0xff]  ;;  %v136_v54 = vld [vmem:[#allocation5 + $0x220] sm:$0xff]  ;;  %v135_v56 = vld [vmem:[#allocation5 + $0x218] sm:$0xff]  ;;  %v203_v34 = vshrl.u32 %v202_v19, 7 }
  0x30   :  { %338 = vmatpush1.msra.mxu1 %v81_v35  ;;  %241 = vmatprep.subr.mxu0 %v145_v36  ;;  %v71_v55 = vld [vmem:[#allocation5 + $0x20] sm:$0xff]  ;;  %v70_v57 = vld [vmem:[#allocation5 + $0x18] sm:$0xff]  ;;  %v134_v58 = vld [vmem:[#allocation5 + $0x210] sm:$0xff] }
  0x31   :  { %339 = vmatprep.subr.mxu1 %v80_v37  ;;  %242 = vmatpush1.msra.mxu0 %v144_v38  ;;  %v69_v59 = vld [vmem:[#allocation5 + $0x10] sm:$0xff]  ;;  %v133_v60 = vld [vmem:[#allocation5 + $0x208] sm:$0xff]  ;;  %v132_v62 = vld [vmem:[#allocation5 + $0x200] sm:$0xff] }
  0x32   :  { %340 = vmatpush1.msra.mxu1 %v79_v39  ;;  %243 = vmatprep.subr.mxu0 %v143_v40  ;;  %v68_v61 = vld [vmem:[#allocation5 + $0x8] sm:$0xff]  ;;  %v67_v63 = vld [vmem:[#allocation5] sm:$0xff]  ;;  %v195_v0 = vld [vmem:[#allocation5 + $0x3f8] sm:$0xff] }
  0x33   :  { %341 = vmatprep.subr.mxu1 %v78_v41  ;;  %244 = vmatpush1.msra.mxu0 %v142_v42  ;;  %v130_v1 = vld [vmem:[#allocation5 + $0x1f8] sm:$0xff]  ;;  %v194_v2 = vld [vmem:[#allocation5 + $0x3f0] sm:$0xff]  ;;  %v193_v4 = vld [vmem:[#allocation5 + $0x3e8] sm:$0xff] }
  0x34   :  { %342 = vmatpush1.msra.mxu1 %v77_v43  ;;  %245 = vmatprep.subr.mxu0 %v141_v44  ;;  %v129_v3 = vld [vmem:[#allocation5 + $0x1f0] sm:$0xff]  ;;  %v128_v5 = vld [vmem:[#allocation5 + $0x1e8] sm:$0xff]  ;;  %v192_v6 = vld [vmem:[#allocation5 + $0x3e0] sm:$0xff] }
  0x35   :  { %343 = vmatprep.subr.mxu1 %v76_v45  ;;  %246 = vmatpush1.msra.mxu0 %v140_v46  ;;  %v127_v7 = vld [vmem:[#allocation5 + $0x1e0] sm:$0xff]  ;;  %v191_v8 = vld [vmem:[#allocation5 + $0x3d8] sm:$0xff]  ;;  %v190_v10 = vld [vmem:[#allocation5 + $0x3d0] sm:$0xff]  ;;  %v201_v46 = vunpack.c.0.s8 %v200_v30 }
  0x36   :  { %344 = vmatpush1.msra.mxu1 %v75_v47  ;;  %247 = vmatprep.subr.mxu0 %v139_v48  ;;  %v126_v9 = vld [vmem:[#allocation5 + $0x1d8] sm:$0xff]  ;;  %v125_v11 = vld [vmem:[#allocation5 + $0x1d0] sm:$0xff]  ;;  %v189_v12 = vld [vmem:[#allocation5 + $0x3c8] sm:$0xff] }
  0x37   :  { %345 = vmatprep.subr.mxu1 %v74_v49  ;;  %248 = vmatpush1.msra.mxu0 %v138_v50  ;;  %v124_v13 = vld [vmem:[#allocation5 + $0x1c8] sm:$0xff]  ;;  %v188_v14 = vld [vmem:[#allocation5 + $0x3c0] sm:$0xff]  ;;  %v187_v16 = vld [vmem:[#allocation5 + $0x3b8] sm:$0xff] }
  0x38   :  { %346 = vmatpush1.msra.mxu1 %v73_v51  ;;  %249 = vmatprep.subr.mxu0 %v137_v52  ;;  %v123_v15 = vld [vmem:[#allocation5 + $0x1c0] sm:$0xff]  ;;  %v122_v17 = vld [vmem:[#allocation5 + $0x1b8] sm:$0xff]  ;;  %v186_v18 = vld [vmem:[#allocation5 + $0x3b0] sm:$0xff] }
  0x39   :  { %347 = vmatprep.subr.mxu1 %v72_v53  ;;  %250 = vmatpush1.msra.mxu0 %v136_v54  ;;  %v121_v20 = vld [vmem:[#allocation5 + $0x1b0] sm:$0xff]  ;;  %v185_v21 = vld [vmem:[#allocation5 + $0x3a8] sm:$0xff]  ;;  %v184_v23 = vld [vmem:[#allocation5 + $0x3a0] sm:$0xff] }
  0x3a   :  { %348 = vmatpush1.msra.mxu1 %v71_v55  ;;  %251 = vmatprep.subr.mxu0 %v135_v56  ;;  %v120_v22 = vld [vmem:[#allocation5 + $0x1a8] sm:$0xff]  ;;  %v119_v24 = vld [vmem:[#allocation5 + $0x1a0] sm:$0xff]  ;;  %v183_v25 = vld [vmem:[#allocation5 + $0x398] sm:$0xff] }
  0x3b   :  { %349 = vmatprep.subr.mxu1 %v70_v57  ;;  %252 = vmatpush1.msra.mxu0 %v134_v58  ;;  %v118_v26 = vld [vmem:[#allocation5 + $0x198] sm:$0xff]  ;;  %v182_v27 = vld [vmem:[#allocation5 + $0x390] sm:$0xff]  ;;  %v181_v31 = vld [vmem:[#allocation5 + $0x388] sm:$0xff] }
  0x3c   :  { %350 = vmatpush1.msra.mxu1 %v69_v59  ;;  %253 = vmatprep.subr.mxu0 %v133_v60  ;;  %v117_v28 = vld [vmem:[#allocation5 + $0x190] sm:$0xff]  ;;  %v116_v32 = vld [vmem:[#allocation5 + $0x188] sm:$0xff]  ;;  %v180_v35 = vld [vmem:[#allocation5 + $0x380] sm:$0xff] }
  0x3d   :  { %351 = vmatprep.subr.mxu1 %v68_v61  ;;  %254 = vmatpush1.msra.mxu0 %v132_v62  ;;  %v40_v33 = vld [vmem:[#allocation2] ss:$4 sm:$0x3]  ;;  %v115_v36 = vld [vmem:[#allocation5 + $0x180] sm:$0xff]  ;;  %v179_v48 = vld [vmem:[#allocation5 + $0x378] sm:$0xff] }
  0x3e   :  { %352 = vmatpush1.msra.mxu1 %v67_v63  ;;  %255 = vmatprep.subr.mxu0 %v195_v0  ;;  %v42_v37 = vld [vmem:[#allocation2 + $0x8] ss:$4 sm:$0x3]  ;;  %v44_v38 = vld [vmem:[#allocation2 + $0x1] ss:$4 sm:$0x3]  ;;  %v546_v0 = vsub.s32 %v201_v46, %v203_v34 }
  0x3f   :  { %353 = vmatprep.subr.mxu1 %v130_v1  ;;  %256 = vmatpush2.msra.mxu0 %v194_v2  ;;  %v46_v39 = vld [vmem:[#allocation2 + $0x9] ss:$4 sm:$0x3]  ;;  %v49_v40 = vmax.f32 %v40_v33, %v44_v38  ;;  %v52_v41 = vld [vmem:[#allocation2 + $0x2] ss:$4 sm:$0x3]  ;;  %v47_v42 = vadd.f32 %v44_v38, %v40_v33 }
  0x40   :  { %354 = vmatpush2.msra.mxu1 %v129_v3  ;;  %257 = vmatprep.subr.mxu0 %v193_v4  ;;  %v50_v43 = vmax.f32 %v42_v37, %v46_v39  ;;  %v54_v44 = vld [vmem:[#allocation2 + $0xa] ss:$4 sm:$0x3]  ;;  %v60_v45 = vld [vmem:[#allocation2 + $0x3] ss:$4 sm:$0x3]  ;;  %v48_v47 = vadd.f32 %v46_v39, %v42_v37 }
  0x41   :  { %355 = vmatprep.subr.mxu1 %v128_v5  ;;  %258 = vmatpush2.msra.mxu0 %v192_v6  ;;  %v114_v49 = vld [vmem:[#allocation5 + $0x178] sm:$0xff]  ;;  %v57_v50 = vmax.f32 %v49_v40, %v52_v41  ;;  %v55_v52 = vadd.f32 %v52_v41, %v47_v42  ;;  %v178_v53 = vld [vmem:[#allocation5 + $0x370] sm:$0xff]  ;;  %v177_v57 = vld [vmem:[#allocation5 + $0x368] sm:$0xff] }
  0x42   :  { %356 = vmatpush2.msra.mxu1 %v127_v7  ;;  %259 = vmatprep.subr.mxu0 %v191_v8  ;;  %v62_v51 = vld [vmem:[#allocation2 + $0xb] ss:$4 sm:$0x3]  ;;  %v113_v54 = vld [vmem:[#allocation5 + $0x170] sm:$0xff]  ;;  %v58_v55 = vmax.f32 %v50_v43, %v54_v44  ;;  %v56_v56 = vadd.f32 %v54_v44, %v48_v47  ;;  %v112_v58 = vld [vmem:[#allocation5 + $0x168] sm:$0xff] }
  0x43   :  { %357 = vmatprep.subr.mxu1 %v126_v9  ;;  %260 = vmatpush2.msra.mxu0 %v190_v10  ;;  %v65_v59 = vmax.f32 %v57_v50, %v60_v45  ;;  %v63_v60 = vadd.f32 %v60_v45, %v55_v52  ;;  %v176_v61 = vld [vmem:[#allocation5 + $0x360] sm:$0xff]  ;;  %v175_v2 = vld [vmem:[#allocation5 + $0x358] sm:$0xff]  ;;  %v174_v4 = vld [vmem:[#allocation5 + $0x350] sm:$0xff] }
  0x44   :  { %358 = vmatpush2.msra.mxu1 %v125_v11  ;;  %261 = vmatprep.subr.mxu0 %v189_v12  ;;  %v111_v62 = vld [vmem:[#allocation5 + $0x160] sm:$0xff]  ;;  %v66_v63 = vmax.f32 %v58_v55, %v62_v51  ;;  %v64_v1 = vadd.f32 %v62_v51, %v56_v56  ;;  %v110_v3 = vld [vmem:[#allocation5 + $0x158] sm:$0xff]  ;;  %v109_v5 = vld [vmem:[#allocation5 + $0x150] sm:$0xff] }
  0x45   :  { %359 = vmatprep.subr.mxu1 %v124_v13  ;;  %262 = vmatpush2.msra.mxu0 %v188_v14  ;;  %v173_v8 = vld [vmem:[#allocation5 + $0x348] sm:$0xff]  ;;  %v172_v10 = vld [vmem:[#allocation5 + $0x340] sm:$0xff]  ;;  %v171_v14 = vld [vmem:[#allocation5 + $0x338] sm:$0xff] }
  0x46   :  { %360 = vmatpush2.msra.mxu1 %v123_v15  ;;  %263 = vmatprep.subr.mxu0 %v187_v16  ;;  %v198_v6 = vcombine.low %v65_v59, %v66_v63  ;;  %v296_v7 = vcombine.low %v63_v60, %v64_v1  ;;  %v108_v9 = vld [vmem:[#allocation5 + $0x148] sm:$0xff]  ;;  %v107_v11 = vld [vmem:[#allocation5 + $0x140] sm:$0xff]  ;;  %v106_v15 = vld [vmem:[#allocation5 + $0x138] sm:$0xff] }
  0x47   :  { %361 = vmatprep.subr.mxu1 %v122_v17  ;;  %264 = vmatpush2.msra.mxu0 %v186_v18  ;;  %v170_v16 = vld [vmem:[#allocation5 + $0x330] sm:$0xff]  ;;  %v169_v18 = vld [vmem:[#allocation5 + $0x328] sm:$0xff]  ;;  %v99_v33 = vld [vmem:[#allocation5 + $0x100] sm:$0xff] }
  0x48   :  { %362 = vmatpush2.msra.mxu1 %v121_v20  ;;  %265 = vmatprep.subr.mxu0 %v185_v21  ;;  %v205_v12 = vrot.slane %v198_v6, %v546_v0  ;;  %v303_v13 = vrot.slane %v296_v7, %v546_v0  ;;  %v105_v17 = vld [vmem:[#allocation5 + $0x130] sm:$0xff]  ;;  %v104_v19 = vld [vmem:[#allocation5 + $0x128] sm:$0xff]  ;;  %v168_v21 = vld [vmem:[#allocation5 + $0x320] sm:$0xff] }
  0x49   :  { %363 = vmatprep.subr.mxu1 %v120_v22  ;;  %266 = vmatpush2.msra.mxu0 %v184_v23  ;;  %v103_v22 = vld [vmem:[#allocation5 + $0x120] sm:$0xff]  ;;  %v100_v29 = vld [vmem:[#allocation5 + $0x108] sm:$0xff] }
  0x4a   :  { %364 = vmatpush2.msra.mxu1 %v119_v24  ;;  %267 = vmatprep.subr.mxu0 %v183_v25  ;;  %v206_v20 = vcombine.high %v205_v12, %v205_v12  ;;  %v304_v23 = vcombine.high %v303_v13, %v303_v13  ;;  %v167_v24 = vld [vmem:[#allocation5 + $0x318] sm:$0xff]  ;;  %v213_v34 = vrot.slane %v205_v12, %v546_v0 }
  0x4b   :  { %365 = vmatprep.subr.mxu1 %v118_v26  ;;  %268 = vmatpush2.msra.mxu0 %v182_v27  ;;  %v102_v25 = vld [vmem:[#allocation5 + $0x118] sm:$0xff]  ;;  %v166_v26 = vld [vmem:[#allocation5 + $0x310] sm:$0xff] }
  0x4c   :  { %366 = vmatpush2.msra.mxu1 %v117_v28  ;;  %269 = vmatprep.subr.mxu0 %v181_v31  ;;  %v101_v27 = vld [vmem:[#allocation5 + $0x110] sm:$0xff]  ;;  %v165_v28 = vld [vmem:[#allocation5 + $0x308] sm:$0xff]  ;;  %v220_v30 = vrot.slane %v206_v20, %v546_v0  ;;  %v164_v31 = vld [vmem:[#allocation5 + $0x300] sm:$0xff] }
  0x4d   :  { %367 = vmatprep.subr.mxu1 %v116_v32  ;;  %270 = vmatpush2.msra.mxu0 %v180_v35  ;;  %v318_v32 = vrot.slane %v304_v23, %v546_v0  ;;  %v311_v35 = vrot.slane %v303_v13, %v546_v0 }
  0x4e   :  { %368 = vmatpush2.msra.mxu1 %v115_v36  ;;  %271 = vmatprep.subr.mxu0 %v179_v48 }
  0x4f   :  { %369 = vmatprep.subr.mxu1 %v114_v49  ;;  %272 = vmatpush2.msra.mxu0 %v178_v53 }
  0x50   :  { %370 = vmatpush2.msra.mxu1 %v113_v54  ;;  %273 = vmatprep.subr.mxu0 %v177_v57 }
  0x51   :  { %371 = vmatprep.subr.mxu1 %v112_v58  ;;  %274 = vmatpush2.msra.mxu0 %v176_v61 }
  0x52   :  { %372 = vmatpush2.msra.mxu1 %v111_v62  ;;  %275 = vmatprep.subr.mxu0 %v175_v2 }
  0x53   :  { %373 = vmatprep.subr.mxu1 %v110_v3  ;;  %276 = vmatpush2.msra.mxu0 %v174_v4 }
  0x54   :  { %374 = vmatpush2.msra.mxu1 %v109_v5  ;;  %277 = vmatprep.subr.mxu0 %v173_v8 }
  0x55   :  { %375 = vmatprep.subr.mxu1 %v108_v9  ;;  %278 = vmatpush2.msra.mxu0 %v172_v10 }
  0x56   :  { %376 = vmatpush2.msra.mxu1 %v107_v11  ;;  %279 = vmatprep.subr.mxu0 %v171_v14 }
  0x57   :  { %377 = vmatprep.subr.mxu1 %v106_v15  ;;  %280 = vmatpush2.msra.mxu0 %v170_v16 }
  0x58   :  { %378 = vmatpush2.msra.mxu1 %v105_v17  ;;  %281 = vmatprep.subr.mxu0 %v169_v18 }
  0x59   :  { %379 = vmatprep.subr.mxu1 %v104_v19  ;;  %282 = vmatpush2.msra.mxu0 %v168_v21 }
  0x5a   :  { %380 = vmatpush2.msra.mxu1 %v103_v22  ;;  %283 = vmatprep.subr.mxu0 %v167_v24 }
  0x5b   :  { %381 = vmatprep.subr.mxu1 %v102_v25  ;;  %284 = vmatpush2.msra.mxu0 %v166_v26 }
  0x5c   :  { %382 = vmatpush2.msra.mxu1 %v101_v27  ;;  %285 = vmatprep.subr.mxu0 %v165_v28 }
  0x5d   :  { %383 = vmatprep.subr.mxu1 %v100_v29  ;;  %286 = vmatpush2.msra.mxu0 %v164_v31 }
  0x5e   :  { %287 = vmatprep.mubr.f32.mxu0 %v220_v30  ;;  %384 = vmatpush2.msra.mxu1 %v99_v33 }
  0x5f   :  { %385 = vmatprep.mubr.f32.mxu1 %v318_v32  ;;  %288 = vmatmul.mubr.f32.vlgmr.msra.gmra.mxu0 %v213_v34 }
  0x60   :  { %386 = vmatmul.mubr.f32.vlgmr.msra.gmra.mxu1 %v311_v35 }
 0x11f   :  { %v289_v36 = vpop.f32.mrf.mxu0 }
 0x120   :  { %v387_v37 = vpop.f32.mrf.mxu1 }
 0x121   :  { %v388_v38 = vadd.f32 %v387_v37, %v289_v36  ;;  %v291_v39 = vpop.f32.mrf.mxu0 }
 0x122   :  { %v389_v40 = vpop.f32.mrf.mxu1 }
 0x123   :  { %v432_v41 = vmul.f32 -1.442695, %v388_v38  ;;  %v390_v42 = vadd.f32 %v389_v40, %v291_v39 }
 0x125   :  { %443 = vpow2.f32 %v432_v41  ;;  %v433_v43 = vmul.f32 -1.442695, %v390_v42 }
 0x127   :  { %445 = vpow2.f32 %v433_v43 }
 0x132   :  { %v444_v44 = vpop.eup %443 }
 0x133   :  { %v398_v45 = vadd.f32 1.0, %v444_v44 }
 0x134   :  { %v446_v46 = vpop.eup %445 }
 0x135   :  { %v399_v47 = vadd.f32 1.0, %v446_v46  ;;  %447 = vrcp.f32 %v398_v45 }
 0x137   :  { %449 = vrcp.f32 %v399_v47 }
 0x142   :  { %v448_v48 = vpop.eup %447 }
 0x144   :  { %v450_v49 = vpop.eup %449 }
 0x145   :  { %v406_v50 = vcombine.low %v448_v48, %v450_v49 }
 0x147   :  { %434 = vst.sshfl [vmem:[#allocation7] sm:$0x33 pattern:$0x76325410] %v406_v50 }
 0x148   :  { %502 = shalt.err (!%p499_p0)
}
 0x149   :  { %425 = dma.vmem_to_hbm [thread:$0]  %s423_s1, 64, %s559_s2, [#allocation4]  }
 0x14a   :  { %515 = dma.done.wait [#allocation4], 64  }
 0x14b   :  { %516 = vsyncadd [#allocation4], 4294967232 }
 0x14c   :  { %429 = vsyncpa [#allocation3], 1 }
 0x14d   :  { %430 = vsyncpa [#allocation6], 1 }
 0x14e   :  { %431 = vsyncpa [#allocation4], 1 }

</bundles_post_ra>
